<compile_context>
chip_gen: v6e
topology: v6e:2x2x1
jax: 0.10.0
libtpu: 0.0.40
codegen_flags: <defaults>
</compile_context>

<pallas_src>
import jax
import jax.numpy as jnp
from jax import lax
from jax.experimental import pallas as pl
from jax.experimental.pallas import tpu as pltpu


def _round_up(x: int, m: int) -> int:
    return ((x + m - 1) // m) * m


def _pick_tile(dim: int, pref: int, align: int) -> int:
    """Largest tile <= pref that is a multiple of `align` and divides the
    align-rounded dim, so padding is at most (align - 1) elements."""
    dim_p = _round_up(dim, align)
    pref = max(align, (pref // align) * align)
    if dim_p <= pref:
        return dim_p
    t = pref
    while dim_p % t != 0:
        t -= align
    return t


def dynamic_linear_kernel(bias_ref, scale_ref, x_ref, e_ref, o_ref):
    """One (i, j, k) grid step.

    Accumulates directly into the f32 output tile (its block index (i, j) is
    k-invariant so it stays VMEM-resident across the reduction); the fused
    +bias / *scale epilogue runs once, on the last k step.
    """
    k = pl.program_id(2)

    # [tm, tk] x [tn, tk] -> [tm, tn], contracting the shared D axis directly
    # from the row-major [N, D] layout (no in-kernel transpose).
    partial = lax.dot_general(
        x_ref[...],
        e_ref[...],
        dimension_numbers=(((1,), (1,)), ((), ())),
        preferred_element_type=jnp.float32,
    )

    @pl.when(k == 0)
    def _():
        o_ref[...] = partial

    @pl.when(k != 0)
    def _():
        o_ref[...] = o_ref[...] + partial

    @pl.when(k == pl.num_programs(2) - 1)
    def _():
        o_ref[...] = (o_ref[...] + bias_ref[0]) * scale_ref[0]


def dynamic_linear(x, E, bias, tl, tu, *, tm=512, tn=512, tk=2048,
                   vmem_budget=24 * 1024 * 1024):
    """x: [M, D], E: [N, D], bias/tl: shape-[1] f32 params, tu: python float.

    Returns logits [M, N] = (x @ E.T + bias) / (tl * tu)  (f32).
    """
    M, D = x.shape
    N, D2 = E.shape
    assert D == D2, f"feature mismatch: x has D={D}, E has D={D2}"

    out_dtype = jnp.float32
    # TODO(synk): emit bf16 logits (out_dtype=bf16, keep f32 accumulation) if
    # the downstream consumer tolerates it — halves the M*N writeback.

    # Hoist the scalar epilogue math out of the kernel hot path.
    scale = (1.0 / (tl.astype(jnp.float32) * jnp.float32(tu))).reshape((1,))
    bias = bias.astype(jnp.float32).reshape((1,))

    # bf16 inputs for the MXU; accumulation/epilogue stay f32.
    x = x.astype(jnp.bfloat16)
    E = E.astype(jnp.bfloat16)

    # Tile selection: 16-row alignment for bf16 sublane packing, 128 lanes.
    tm = _pick_tile(M, tm, 16)
    tn = _pick_tile(N, tn, 128)
    D_p = _round_up(D, 128)

    # Double-buffered bf16 input tiles + double-buffered f32 output tile.
    def _footprint(tm_, tn_, tk_):
        return 2 * (tm_ * tk_ + tn_ * tk_) * 2 + 2 * tm_ * tn_ * 4

    # Collapse the reduction axis to a single step when all of D fits.
    if _footprint(tm, tn, D_p) <= vmem_budget:
        tk = D_p
    else:
        tk = _pick_tile(D, tk, 128)
        while _footprint(tm, tn, tk) > vmem_budget and tk > 128:
            tk = _pick_tile(D, tk - 128, 128)

    M_p, N_p = _round_up(M, tm), _round_up(N, tn)
    D_p = _round_up(D, tk)

    # v7x megacore: keep >= 2 blocks on the parallel (i, j) axes if possible.
    if M_p // tm == 1 and N_p // tn == 1:
        if N_p // 128 >= 2:
            tn = _pick_tile(N, (N_p // 2 // 128) * 128, 128)
            N_p = _round_up(N, tn)
        elif M_p // 16 >= 2:
            tm = _pick_tile(M, (M_p // 2 // 16) * 16, 16)
            M_p = _round_up(M, tm)

    # Pad only when required; by construction the pad is < one alignment.
    if (M_p, D_p) != (M, D):
        x = jnp.pad(x, ((0, M_p - M), (0, D_p - D)))
    if (N_p, D_p) != (N, D):
        E = jnp.pad(E, ((0, N_p - N), (0, D_p - D)))

    grid = (M_p // tm, N_p // tn, D_p // tk)

    flops = 2 * M_p * N_p * D_p
    bytes_accessed = (
        grid[1] * M_p * D_p * x.dtype.itemsize      # x re-read per j block
        + grid[0] * N_p * D_p * E.dtype.itemsize    # E re-read per i block
        + M_p * N_p * jnp.dtype(out_dtype).itemsize  # output written once
    )

    out_p = pl.pallas_call(
        dynamic_linear_kernel,
        out_shape=jax.ShapeDtypeStruct((M_p, N_p), out_dtype),
        grid=grid,
        in_specs=[
            pl.BlockSpec(memory_space=pltpu.SMEM),                 # bias  (1,)
            pl.BlockSpec(memory_space=pltpu.SMEM),                 # scale (1,)
            pl.BlockSpec((tm, tk), lambda i, j, k: (i, k)),        # x tile
            pl.BlockSpec((tn, tk), lambda i, j, k: (j, k)),        # E tile
        ],
        out_specs=pl.BlockSpec((tm, tn), lambda i, j, k: (i, j)),  # out tile
        compiler_params=pltpu.CompilerParams(
            dimension_semantics=("parallel", "parallel", "arbitrary"),
            vmem_limit_bytes=48 * 1024 * 1024,
        ),
        cost_estimate=pl.CostEstimate(
            flops=flops, transcendentals=0, bytes_accessed=bytes_accessed
        ),
    )(bias, scale, x, E)

    # Strip padding before returning.
    if (M_p, N_p) != (M, N):
        out_p = out_p[:M, :N]
    return out_p


if __name__ == "__main__":
    key = jax.random.PRNGKey(0)
    k_x, k_e, k_tl, k_b = jax.random.split(key, 4)

    M, D, N = 8, 32, 16   # seq=8, hidden=32, vocab/classes=16
    tu = 2.0

    x = jax.random.normal(k_x, (M, D), dtype=jnp.float32)
    E = jax.random.normal(k_e, (N, D), dtype=jnp.float32)
    # Parameters ~ Normal(0, 0.05), deterministic (shape [1] each).
    tl = 0.05 * jax.random.normal(k_tl, (1,), dtype=jnp.float32)
    bias = 0.05 * jax.random.normal(k_b, (1,), dtype=jnp.float32)

    out = dynamic_linear(x, E, bias, tl, tu)
    out = jax.block_until_ready(out)

    # Reference check in plain JAX (same semantics as the PyTorch forward).
    ref = (x @ E.T + bias[0]) / (tl[0] * tu)
    assert out.shape == (M, N), out.shape
    # bf16 inputs -> use a relative-error check (f32 accumulation keeps the
    # error well under 1%).
    rel_err = float(jnp.max(jnp.abs(out - ref)) / (jnp.max(jnp.abs(ref)) + 1e-6))
    assert rel_err < 2e-2, rel_err

    print("KERNEL_OK")
</pallas_src>

<mosaic_0001>
module attributes {stable_mosaic.version = 11 : i64} {
  func.func @dynamic_linear_kernel(%arg0: i32, %arg1: i32, %arg2: i32, %arg3: memref<1xf32, #tpu.memory_space<smem>>, %arg4: memref<1xf32, #tpu.memory_space<smem>>, %arg5: memref<16x128xbf16, #tpu.memory_space<vmem>>, %arg6: memref<128x128xbf16, #tpu.memory_space<vmem>>, %arg7: memref<16x128xf32, #tpu.memory_space<vmem>>) attributes {dimension_semantics = [#tpu.dimension_semantics<parallel>, #tpu.dimension_semantics<parallel>, #tpu.dimension_semantics<arbitrary>], iteration_bounds = array<i64: 1, 1, 1>, scalar_prefetch = 0 : i64, scratch_operands = 0 : i64, tpu.core_type = #tpu.core_type<tc>, window_params = [{transform_indices = @transform_0, window_bounds = array<i64: 1>}, {transform_indices = @transform_1, window_bounds = array<i64: 1>}, {transform_indices = @transform_2, window_bounds = array<i64: 16, 128>}, {transform_indices = @transform_3, window_bounds = array<i64: 128, 128>}, {transform_indices = @transform_4, window_bounds = array<i64: 16, 128>}]} {
    %c0 = arith.constant 0 : index
    %c0_0 = arith.constant 0 : index
    %0 = vector.load %arg5[%c0, %c0_0] : memref<16x128xbf16, #tpu.memory_space<vmem>>, vector<16x128xbf16>
    %c0_1 = arith.constant 0 : index
    %c0_2 = arith.constant 0 : index
    %1 = vector.load %arg6[%c0_1, %c0_2] : memref<128x128xbf16, #tpu.memory_space<vmem>>, vector<128x128xbf16>
    %cst = arith.constant dense<0.000000e+00> : vector<16x128xf32>
    %2 = tpu.matmul %0, %1, %cst {dimension_numbers = #tpu.dot_dimension_numbers<[1], [1], [0], [0], [0, 0, 1, 0], [], []>} : vector<16x128xbf16>, vector<128x128xbf16>, vector<16x128xf32> -> vector<16x128xf32>
    %c0_i32 = arith.constant 0 : i32
    %3 = arith.cmpi eq, %arg2, %c0_i32 : i32
    %4 = arith.extui %3 : i1 to i32
    %c0_i32_3 = arith.constant 0 : i32
    %5 = arith.cmpi ne, %4, %c0_i32_3 : i32
    scf.if %5 {
      %c0_8 = arith.constant 0 : index
      %c0_9 = arith.constant 0 : index
      %12 = vector.load %arg7[%c0_8, %c0_9] : memref<16x128xf32, #tpu.memory_space<vmem>>, vector<16x128xf32>
      tpu.vector_store %arg7[%c0_8, %c0_9], %2 {strides = array<i32>} : memref<16x128xf32, #tpu.memory_space<vmem>>, vector<16x128xf32>,
    } else {
    }
    %c0_i32_4 = arith.constant 0 : i32
    %6 = arith.cmpi ne, %arg2, %c0_i32_4 : i32
    %7 = arith.extui %6 : i1 to i32
    %c0_i32_5 = arith.constant 0 : i32
    %8 = arith.cmpi ne, %7, %c0_i32_5 : i32
    scf.if %8 {
      %c0_8 = arith.constant 0 : index
      %c0_9 = arith.constant 0 : index
      %12 = vector.load %arg7[%c0_8, %c0_9] : memref<16x128xf32, #tpu.memory_space<vmem>>, vector<16x128xf32>
      %13 = arith.addf %12, %2 : vector<16x128xf32>
      %c0_10 = arith.constant 0 : index
      %c0_11 = arith.constant 0 : index
      %14 = vector.load %arg7[%c0_10, %c0_11] : memref<16x128xf32, #tpu.memory_space<vmem>>, vector<16x128xf32>
      tpu.vector_store %arg7[%c0_10, %c0_11], %13 {strides = array<i32>} : memref<16x128xf32, #tpu.memory_space<vmem>>, vector<16x128xf32>,
    } else {
    }
    %c0_i32_6 = arith.constant 0 : i32
    %9 = arith.cmpi eq, %arg2, %c0_i32_6 : i32
    %10 = arith.extui %9 : i1 to i32
    %c0_i32_7 = arith.constant 0 : i32
    %11 = arith.cmpi ne, %10, %c0_i32_7 : i32
    scf.if %11 {
      %c0_8 = arith.constant 0 : index
      %c0_9 = arith.constant 0 : index
      %12 = vector.load %arg7[%c0_8, %c0_9] : memref<16x128xf32, #tpu.memory_space<vmem>>, vector<16x128xf32>
      %c0_10 = arith.constant 0 : index
      %13 = memref.load %arg3[%c0_10] : memref<1xf32, #tpu.memory_space<smem>>
      %14 = vector.broadcast %13 : f32 to vector<16x128xf32>
      %15 = arith.addf %12, %14 : vector<16x128xf32>
      %c0_11 = arith.constant 0 : index
      %16 = memref.load %arg4[%c0_11] : memref<1xf32, #tpu.memory_space<smem>>
      %17 = vector.broadcast %16 : f32 to vector<16x128xf32>
      %18 = arith.mulf %15, %17 : vector<16x128xf32>
      %c0_12 = arith.constant 0 : index
      %c0_13 = arith.constant 0 : index
      %19 = vector.load %arg7[%c0_12, %c0_13] : memref<16x128xf32, #tpu.memory_space<vmem>>, vector<16x128xf32>
      tpu.vector_store %arg7[%c0_12, %c0_13], %18 {strides = array<i32>} : memref<16x128xf32, #tpu.memory_space<vmem>>, vector<16x128xf32>,
    } else {
    }
    return
  }
  func.func @transform_0(%arg0: i32, %arg1: i32, %arg2: i32) -> i32 {
    %c0_i32 = arith.constant 0 : i32
    %c0_i32_0 = arith.constant 0 : i32
    return %c0_i32 : i32
  }
  func.func @transform_1(%arg0: i32, %arg1: i32, %arg2: i32) -> i32 {
    %c0_i32 = arith.constant 0 : i32
    %c0_i32_0 = arith.constant 0 : i32
    return %c0_i32 : i32
  }
  func.func @transform_2(%arg0: i32, %arg1: i32, %arg2: i32) -> (i32, i32) {
    %c0_i32 = arith.constant 0 : i32
    return %arg0, %arg2 : i32, i32
  }
  func.func @transform_3(%arg0: i32, %arg1: i32, %arg2: i32) -> (i32, i32) {
    %c0_i32 = arith.constant 0 : i32
    return %arg1, %arg2 : i32, i32
  }
  func.func @transform_4(%arg0: i32, %arg1: i32, %arg2: i32) -> (i32, i32) {
    %c0_i32 = arith.constant 0 : i32
    return %arg0, %arg1 : i32, i32
  }
}

</mosaic_0001>

<bundles_post_ra>
// kernel: tpu_custom_call.1
= control target key start
LH: loop header
LB: loop body
LE: loop exit
PB: predicated region body
PF: predicated region fallthrough
CT: control target
= control target key end

     0   :  { %11 = vsyncpa [#allocation5], 0  ;;  %s382_s0 = inlined_call_operand.<no memory space> [shape: f32[1], index: 0, kind: input, shape index: {}]   ;;  %s383_s1 = inlined_call_operand.<no memory space> [shape: f32[1], index: 1, kind: input, shape index: {}]   ;;  %s384_s2 = inlined_call_operand.hbm [shape: bf16[16,128], index: 2, kind: input, shape index: {}]   ;;  %s385_s3 = inlined_call_operand.hbm [shape: bf16[128,128], index: 3, kind: input, shape index: {}]   ;;  %s386_s4 = inlined_call_operand.hbm [shape: f32[16,128], index: 4, kind: output, shape index: {}]  }
   0x1   :  { %12 = vsyncpa [#allocation8], 0 }
   0x2   :  { %13 = vsyncpa [#allocation6], 0  ;;  %s333_s15 = smov [#allocation4]  }
   0x3   :  { %s23_s16 = sshll.u32 %s333_s15, 4  ;;  %s24_s16 = int_to_ptr.vmem [resolvable:$true] %s23_s16 }
   0x4   :  { %s275_s17 = scalar_lea.vmem %s24_s16, 128  ;;  %p280_p1 = scmp.lt.s32.totalorder %s24_s16, %s24_s16 }
   0x5   :  { %p276_p0 = scmp.ne.s32.totalorder %s24_s16, %s275_s17  ;;  %p281_p2 = scmp.lt.s32.totalorder %s275_s17, %s275_s17 }
   0x7   :  { %p282_p3 = por %p281_p2, %p280_p1 }
   0x9   :  { %p283_p4 = pnand %p282_p3, %p276_p0 }
   0xb   :  { %286 = shalt.err (!%p283_p4)
}
   0xc   :  { %s334_s18 = smov 64   ;;  %s335_s19 = smov 4  }
   0xd   :  { %29 = dma.hbm_to_vmem [thread:$0]  %s384_s2, 128, %s24_s16, [#allocation5], %s334_s18, %s334_s18, %s335_s19  }
   0xe   :  { %s336_s22 = smov [#allocation7]  }
   0xf   :  { %s35_s23 = sshll.u32 %s336_s22, 4  ;;  %s36_s23 = int_to_ptr.vmem [resolvable:$true] %s35_s23 }
  0x10   :  { %s295_s24 = scalar_lea.vmem %s36_s23, 1024  ;;  %p300_p6 = scmp.lt.s32.totalorder %s36_s23, %s36_s23 }
  0x11   :  { %p296_p5 = scmp.ne.s32.totalorder %s36_s23, %s295_s24  ;;  %p301_p7 = scmp.lt.s32.totalorder %s295_s24, %s295_s24 }
  0x13   :  { %p302_p8 = por %p301_p7, %p300_p6 }
  0x15   :  { %p303_p9 = pnand %p302_p8, %p296_p5 }
  0x17   :  { %306 = shalt.err (!%p303_p9)
}
  0x18   :  { %41 = dma.hbm_to_vmem [thread:$0]  %s385_s3, 1024, %s36_s23, [#allocation8], %s334_s18, %s334_s18, %s335_s19  }
  0x19   :  { %327 = dma.done.wait [#allocation5], 128  }
  0x1a   :  { %328 = vsyncadd [#allocation5], 4294967168 }
  0x1b   :  { %329 = dma.done.wait [#allocation8], 1024  }
  0x1c   :  { %330 = vsyncadd [#allocation8], 4294966272  ;;  %v337_v0 = vmov 0.0   ;;  %vm338_vm0 = vmmov 0   ;;  %v258_v1 = vld [vmem:[#allocation7 + $0x38] sm:$0xff]   ;;  %v259_v2 = vld [vmem:[#allocation7 + $0x30] sm:$0xff]   ;;  %v184_v10 = vstv %s382_s0  ;;  %v188_v12 = vstv %s383_s1 }
  0x1d   :  { %229 = vmatprep.subr.bf16.mxu0 %v337_v0  ;;  %245 = vmatprep.mubr.msk.bf16.mxu0 %vm338_vm0, %v337_v0  ;;  %v260_v3 = vld [vmem:[#allocation7 + $0x28] sm:$0xff]   ;;  %v261_v4 = vld [vmem:[#allocation7 + $0x20] sm:$0xff]   ;;  %v262_v5 = vld [vmem:[#allocation7 + $0x18] sm:$0xff]   ;;  %s339_s29 = smov [#allocation9]  }
  0x1e   :  { %230 = vmatpush3.bf16.xpose.msra.mxu0 %v258_v1  ;;  %v263_v6 = vld [vmem:[#allocation7 + $0x10] sm:$0xff]   ;;  %v264_v7 = vld [vmem:[#allocation7 + $0x8] sm:$0xff]   ;;  %v265_v8 = vld [vmem:[#allocation7] sm:$0xff]   ;;  %s198_s30 = sshll.u32 %s339_s29, 4  ;;  %s199_s30 = int_to_ptr.vmem [resolvable:$true] %s198_s30 }
  0x1f   :  { %231 = vmatprep.subr.bf16.mxu0 %v337_v0  ;;  %v266_v9 = vld [vmem:[#allocation4] sm:$0xff]   ;;  %s307_s5 = scalar_lea.vmem %s199_s30, 256  ;;  %p312_p11 = scmp.lt.s32.totalorder %s199_s30, %s199_s30 }
  0x20   :  { %p308_p10 = scmp.ne.s32.totalorder %s199_s30, %s307_s5  ;;  %p313_p12 = scmp.lt.s32.totalorder %s307_s5, %s307_s5 }
  0x22   :  { %p314_p13 = por %p313_p12, %p312_p11 }
  0x24   :  { %p315_p0 = pnand %p314_p13, %p308_p10 }
  0x26   :  { %232 = vmatpush3.bf16.xpose.msra.mxu0 %v259_v2 }
  0x27   :  { %233 = vmatprep.subr.bf16.mxu0 %v337_v0 }
  0x2e   :  { %234 = vmatpush3.bf16.xpose.msra.mxu0 %v260_v3 }
  0x2f   :  { %235 = vmatprep.subr.bf16.mxu0 %v337_v0 }
  0x36   :  { %236 = vmatpush3.bf16.xpose.msra.mxu0 %v261_v4 }
  0x37   :  { %237 = vmatprep.subr.bf16.mxu0 %v337_v0 }
  0x3e   :  { %238 = vmatpush3.bf16.xpose.msra.mxu0 %v262_v5 }
  0x3f   :  { %239 = vmatprep.subr.bf16.mxu0 %v337_v0 }
  0x46   :  { %240 = vmatpush3.bf16.xpose.msra.mxu0 %v263_v6 }
  0x47   :  { %241 = vmatprep.subr.bf16.mxu0 %v337_v0 }
  0x4e   :  { %242 = vmatpush3.bf16.xpose.msra.mxu0 %v264_v7 }
  0x4f   :  { %243 = vmatprep.subr.bf16.mxu0 %v337_v0 }
  0x56   :  { %244 = vmatpush3.bf16.xpose.msra.mxu0 %v265_v8 }
  0x5d   :  { %246 = vmatmul.mubr.bf16.vlgmr.msra.gmra.mxu0 %v266_v9 }
 0x11d   :  { %v155_v11 = vpop.f32.mrf.mxu0 }
 0x11e   :  { %v185_v13 = vadd.f32 %v184_v10, %v155_v11 }
 0x11f   :  { %v247_v14 = vpop.f32.mrf.mxu0 }
 0x120   :  { %v189_v15 = vmul.f32 %v188_v12, %v185_v13 }
 0x121   :  { %v158_v16 = vpop.f32.mrf.mxu0 }
 0x122   :  { %191 = vst [vmem:[#allocation9] sm:$0xff] %v189_v15  ;;  %v186_v17 = vadd.f32 %v184_v10, %v158_v16 }
 0x123   :  { %v248_v18 = vpop.f32.mrf.mxu0 }
 0x124   :  { %v190_v19 = vmul.f32 %v188_v12, %v186_v17 }
 0x126   :  { %192 = vst [vmem:[#allocation9 + $0x8] sm:$0xff] %v190_v19 }
 0x127   :  { %318 = shalt.err (!%p315_p0)
}
 0x128   :  { %s340_s0 = smov 128   ;;  %s341_s1 = smov 8  }
 0x129   :  { %204 = dma.vmem_to_hbm [thread:$0]  %s199_s30, 256, %s386_s4, [#allocation6], %s340_s0, %s340_s0, %s341_s1  }
 0x12a   :  { %331 = dma.done.wait [#allocation6], 256  }
 0x12b   :  { %332 = vsyncadd [#allocation6], 4294967040 }
 0x12c   :  { %208 = vsyncpa [#allocation5], 1 }
 0x12d   :  { %209 = vsyncpa [#allocation8], 1 }
 0x12e   :  { %210 = vsyncpa [#allocation6], 1 }

</bundles_post_ra>
